<compile_context>
chip_gen: v7x
topology: tpu7x:2x2x1
jax: 0.10.0
libtpu: 0.0.40
codegen_flags: <defaults>
</compile_context>

<pallas_src>
import functools

import jax
import jax.numpy as jnp
from jax.experimental import pallas as pl
from jax.experimental.pallas import tpu as pltpu


# ----------------------------- in-kernel math ------------------------------

def _focal_elementwise(x, is_pos, gamma, alpha):
    """Per-element sigmoid focal loss. x: (tn, Cp) f32 logits, is_pos: bool packed one-hot."""
    ax = jnp.abs(x)
    e = jnp.exp(-ax)                             # shared EUP exp
    lse = jnp.log(1.0 + e)                       # shared EUP log
    log_p = -(jnp.maximum(-x, 0.0) + lse)        # log(sigmoid(x))
    log_1mp = -(jnp.maximum(x, 0.0) + lse)       # log(1 - sigmoid(x))
    inv = 1.0 / (1.0 + e)                        # single divide, no extra exp
    p = jnp.where(x >= 0.0, inv, e * inv)        # sigmoid(x)
    q = 1.0 - p

    g = float(gamma)
    if g == int(g) and 0.0 <= g <= 4.0:
        # integer gamma (incl. default 2.0): repeated multiplies on the 4-wide VPU
        wq = jnp.ones_like(q)
        wp = jnp.ones_like(p)
        for _ in range(int(g)):
            wq = wq * q
            wp = wp * p
    else:
        # generic fallback for non-integer gamma (float-exponent pow -> EUP)
        wq = jnp.power(q, g)
        wp = jnp.power(p, g)

    pos = (-alpha) * wq * log_p                  # -alpha * (1-p)^g * log(p)
    neg = (alpha - 1.0) * wp * log_1mp           # -(1-alpha) * p^g * log(1-p)
    return jnp.where(is_pos, pos, neg)


def _one_hot_from_packed_targets(tgt, tn, cp, k):
    """tgt: (tn, k) int32 lane-offset class ids (-1 == no positive). Returns (lane_iota, bool one-hot)."""
    lane = jax.lax.broadcasted_iota(jnp.int32, (tn, cp), 1)
    is_pos = lane == tgt[:, 0:1]
    for i in range(1, k):                        # small static loop (k <= 16), pure VPU compares
        is_pos = jnp.logical_or(is_pos, lane == tgt[:, i:i + 1])
    return lane, is_pos


# ------------------------------ Pallas kernels ------------------------------

def _focal_elem_kernel(pred_ref, tgt_ref, loss_ref, *, gamma, alpha, tn, cp, k):
    x = pred_ref[...].astype(jnp.float32)
    _, is_pos = _one_hot_from_packed_targets(tgt_ref[...], tn, cp, k)
    loss_ref[...] = _focal_elementwise(x, is_pos, gamma, alpha)


def _focal_sum_kernel(pred_ref, tgt_ref, psum_ref, *, gamma, alpha, tn, cp, k, c, n_valid):
    x = pred_ref[...].astype(jnp.float32)
    lane, is_pos = _one_hot_from_packed_targets(tgt_ref[...], tn, cp, k)
    loss = _focal_elementwise(x, is_pos, gamma, alpha)

    # Mask out padded samples: original sample id = packed_row * k + (lane // C).
    row = pl.program_id(0) * tn + jax.lax.broadcasted_iota(jnp.int32, (tn, cp), 0)
    slot = jnp.zeros((tn, cp), jnp.int32)
    for i in range(1, k):                        # lane // C without an integer divide
        slot = slot + (lane >= i * c).astype(jnp.int32)
    valid = (row * k + slot) < n_valid
    loss = jnp.where(valid, loss, 0.0)

    # One f32 partial per grid block (grid is megacore-parallel; final sum done in JAX).
    psum_ref[...] = jnp.zeros((1, 1), jnp.float32) + jnp.sum(loss)


# ------------------------- wrapper: packing & tiling -------------------------

def _packing_params(n, c, max_block_bytes=2 << 20, tn_cap=1024):
    """Static (shape-derived) packing factor k and packed-row tile size tn."""
    k = max(1, min(128 // c, 16)) if c < 128 else 1
    cp = k * c
    rows = -(-n // k)                            # packed rows holding real data
    rows8 = max(8, -(-rows // 8) * 8)
    tn_bytes = max(8, (max_block_bytes // (cp * 4)) // 8 * 8)
    tn = max(8, min(tn_cap, tn_bytes, rows8))    # big tile, but never bigger than the data
    grid = -(-rows // tn)
    np_pad = grid * tn
    return k, cp, tn, grid, np_pad


def _pack_inputs(pred, target, k, cp, np_pad):
    n, c = pred.shape
    n_pad = np_pad * k
    t = target.astype(jnp.int32).reshape(-1)
    # Lane-offset class id. Out-of-range targets (e.g. mmdet background == C) -> -1,
    # i.e. an all-negative row, matching the CUDA sigmoid_focal_loss behavior.
    offs = (jnp.arange(n, dtype=jnp.int32) % k) * c
    t_g = jnp.where((t >= 0) & (t < c), t + offs, -1)
    pred_p = jnp.pad(pred, ((0, n_pad - n), (0, 0)))
    t_p = jnp.pad(t_g, (0, n_pad - n), constant_values=-1)
    # Contiguous reshapes (row-major, no data movement): (n_pad, C) -> (np_pad, k*C).
    return pred_p.reshape(np_pad, cp), t_p.reshape(np_pad, k)


def _focal_loss_sum_pallas(pred, target, gamma, alpha):
    n, c = pred.shape
    k, cp, tn, grid, np_pad = _packing_params(n, c)
    pred_p, tgt_p = _pack_inputs(pred, target, k, cp, np_pad)
    kernel = functools.partial(_focal_sum_kernel, gamma=float(gamma), alpha=float(alpha),
                               tn=tn, cp=cp, k=k, c=c, n_valid=n)
    partials = pl.pallas_call(
        kernel,
        out_shape=jax.ShapeDtypeStruct((grid, 1, 1), jnp.float32),
        grid=(grid,),
        in_specs=[pl.BlockSpec((tn, cp), lambda i: (i, 0)),
                  pl.BlockSpec((tn, k), lambda i: (i, 0))],
        out_specs=pl.BlockSpec((None, 1, 1), lambda i: (i, 0, 0)),
        compiler_params=pltpu.CompilerParams(dimension_semantics=("parallel",)),
    )(pred_p, tgt_p)
    return jnp.sum(partials)


def _focal_loss_elem_pallas(pred, target, gamma, alpha):
    n, c = pred.shape
    k, cp, tn, grid, np_pad = _packing_params(n, c)
    pred_p, tgt_p = _pack_inputs(pred, target, k, cp, np_pad)
    kernel = functools.partial(_focal_elem_kernel, gamma=float(gamma), alpha=float(alpha),
                               tn=tn, cp=cp, k=k)
    loss_p = pl.pallas_call(
        kernel,
        out_shape=jax.ShapeDtypeStruct((np_pad, cp), jnp.float32),
        grid=(grid,),
        in_specs=[pl.BlockSpec((tn, cp), lambda i: (i, 0)),
                  pl.BlockSpec((tn, k), lambda i: (i, 0))],
        out_specs=pl.BlockSpec((tn, cp), lambda i: (i, 0)),
        compiler_params=pltpu.CompilerParams(dimension_semantics=("parallel",)),
    )(pred_p, tgt_p)
    # Undo packing/padding (both reshapes contiguous).
    return loss_p.reshape(np_pad * k, c)[:n]


# ------------------------------- public API ---------------------------------

def sigmoid_focal_loss(pred, target, weight=None, gamma=2.0, alpha=0.25,
                       reduction='mean', avg_factor=None):
    """Mirrors mmdet's sigmoid_focal_loss (CUDA variant: target is a class index)."""
    n, c = pred.shape

    # Fast path: no elementwise output written to HBM.
    if weight is None and reduction in ('mean', 'sum'):
        total = _focal_loss_sum_pallas(pred, target, gamma, alpha)
        if avg_factor is None:
            return total / (n * c) if reduction == 'mean' else total
        if reduction == 'mean':
            return total / avg_factor
        raise ValueError('avg_factor can not be used with reduction="sum"')

    # Elementwise path ('none' and/or weighted).
    loss = _focal_loss_elem_pallas(pred, target, gamma, alpha)
    if weight is not None:
        weight = jnp.asarray(weight, dtype=loss.dtype)
        if weight.shape != loss.shape:
            if weight.shape[0] == loss.shape[0]:
                weight = weight.reshape(-1, 1)
            else:
                weight = weight.reshape(loss.shape[0], -1)
        loss = loss * weight

    # weight_reduce_loss semantics
    if avg_factor is None:
        if reduction == 'mean':
            return jnp.mean(loss)
        if reduction == 'sum':
            return jnp.sum(loss)
        if reduction == 'none':
            return loss
        raise ValueError(reduction)
    else:
        if reduction == 'mean':
            return jnp.sum(loss) / avg_factor
        if reduction == 'none':
            return loss
        raise ValueError('avg_factor can not be used with reduction="sum"')


class FocalLoss:
    def __init__(self, use_sigmoid=True, gamma=2.0, alpha=0.25,
                 reduction='mean', loss_weight=1.0):
        assert use_sigmoid is True, 'Only sigmoid focal loss supported now.'
        self.use_sigmoid = use_sigmoid
        self.gamma = gamma
        self.alpha = alpha
        self.reduction = reduction
        self.loss_weight = loss_weight

    def __call__(self, pred, target, weight=None, avg_factor=None, reduction_override=None):
        assert reduction_override in (None, 'none', 'mean', 'sum')
        reduction = reduction_override if reduction_override else self.reduction
        loss_cls = self.loss_weight * sigmoid_focal_loss(
            pred, target, weight, gamma=self.gamma, alpha=self.alpha,
            reduction=reduction, avg_factor=avg_factor)
        return loss_cls


# ------------------------------- reference ----------------------------------

def _reference_focal_loss(pred, target, gamma, alpha):
    n, c = pred.shape
    t_oh = jax.nn.one_hot(target, c, dtype=jnp.float32)
    p = jax.nn.sigmoid(pred)
    log_p = jax.nn.log_sigmoid(pred)
    log_1mp = jax.nn.log_sigmoid(-pred)
    return (t_oh * (-alpha) * (1.0 - p) ** gamma * log_p
            + (1.0 - t_oh) * (-(1.0 - alpha)) * p ** gamma * log_1mp)


if __name__ == "__main__":
    key = jax.random.PRNGKey(0)
    k_pred, k_tgt, k_w = jax.random.split(key, 3)

    N, C = 32, 16   # 32 samples/anchors, 16 classes (packed 8 samples per 128-lane row)
    pred = jax.random.normal(k_pred, (N, C), dtype=jnp.float32) * 2.0
    target = jax.random.randint(k_tgt, (N,), 0, C, dtype=jnp.int32)
    weight = jax.random.uniform(k_w, (N,), minval=0.5, maxval=1.5, dtype=jnp.float32)

    focal = FocalLoss(use_sigmoid=True, gamma=2.0, alpha=0.25,
                      reduction='mean', loss_weight=1.0)
    ref_elem = _reference_focal_loss(pred, target, gamma=2.0, alpha=0.25)

    # mean / sum (sum-only kernel path)
    out_mean = jax.block_until_ready(focal(pred, target))
    assert jnp.allclose(out_mean, jnp.mean(ref_elem), rtol=1e-5, atol=1e-6), (out_mean, jnp.mean(ref_elem))
    out_sum = jax.block_until_ready(focal(pred, target, reduction_override='sum'))
    assert jnp.allclose(out_sum, jnp.sum(ref_elem), rtol=1e-5, atol=1e-5)

    # none (elementwise kernel path)
    out_none = jax.block_until_ready(focal(pred, target, reduction_override='none'))
    assert out_none.shape == (N, C)
    assert jnp.allclose(out_none, ref_elem, rtol=1e-5, atol=1e-6)

    # weighted mean (elementwise kernel path + wrapper weighting)
    out_w = jax.block_until_ready(focal(pred, target, weight=weight))
    assert jnp.allclose(out_w, jnp.mean(ref_elem * weight.reshape(-1, 1)), rtol=1e-5, atol=1e-6)

    # mean with avg_factor (sum-only kernel path)
    out_af = jax.block_until_ready(focal(pred, target, avg_factor=13.0))
    assert jnp.allclose(out_af, jnp.sum(ref_elem) / 13.0, rtol=1e-5, atol=1e-6)

    # non-integer gamma exercises the generic-pow fallback
    focal_g = FocalLoss(gamma=1.5, alpha=0.25, reduction='mean')
    out_g = jax.block_until_ready(focal_g(pred, target))
    ref_g = jnp.mean(_reference_focal_loss(pred, target, gamma=1.5, alpha=0.25))
    assert jnp.allclose(out_g, ref_g, rtol=1e-5, atol=1e-6)

    print("KERNEL_OK")
</pallas_src>

<mosaic_0001>
module attributes {stable_mosaic.version = 11 : i64} {
  func.func @_focal_sum_kernel(%arg0: i32, %arg1: memref<8x128xf32, #tpu.memory_space<vmem>>, %arg2: memref<8x8xi32, #tpu.memory_space<vmem>>, %arg3: memref<1x1x1xf32, #tpu.memory_space<vmem>>) attributes {dimension_semantics = [#tpu.dimension_semantics<parallel>], iteration_bounds = array<i64: 1>, scalar_prefetch = 0 : i64, scratch_operands = 0 : i64, tpu.core_type = #tpu.core_type<tc>, window_params = [{transform_indices = @transform_0, window_bounds = array<i64: 8, 128>}, {transform_indices = @transform_1, window_bounds = array<i64: 8, 8>}, {transform_indices = @transform_2, window_bounds = array<i64: 1, 1, 1>}]} {
    %c0 = arith.constant 0 : index
    %c0_0 = arith.constant 0 : index
    %0 = vector.load %arg1[%c0, %c0_0] : memref<8x128xf32, #tpu.memory_space<vmem>>, vector<8x128xf32>
    %c0_1 = arith.constant 0 : index
    %c0_2 = arith.constant 0 : index
    %1 = vector.load %arg2[%c0_1, %c0_2] : memref<8x8xi32, #tpu.memory_space<vmem>>, vector<8x8xi32>
    %2 = tpu.iota {dimensions = array<i32: 1>} : vector<8x128xi32>
    %3 = vector.extract_strided_slice %1 {offsets = [0, 0], sizes = [8, 1], strides = [1, 1]} : vector<8x8xi32> to vector<8x1xi32>
    %4 = vector.broadcast %3 : vector<8x1xi32> to vector<8x128xi32>
    %5 = arith.cmpi eq, %2, %4 : vector<8x128xi32>
    %6 = vector.extract_strided_slice %1 {offsets = [0, 1], sizes = [8, 1], strides = [1, 1]} : vector<8x8xi32> to vector<8x1xi32>
    %7 = vector.broadcast %6 : vector<8x1xi32> to vector<8x128xi32>
    %8 = arith.cmpi eq, %2, %7 : vector<8x128xi32>
    %9 = arith.ori %5, %8 : vector<8x128xi1>
    %10 = vector.extract_strided_slice %1 {offsets = [0, 2], sizes = [8, 1], strides = [1, 1]} : vector<8x8xi32> to vector<8x1xi32>
    %11 = vector.broadcast %10 : vector<8x1xi32> to vector<8x128xi32>
    %12 = arith.cmpi eq, %2, %11 : vector<8x128xi32>
    %13 = arith.ori %9, %12 : vector<8x128xi1>
    %14 = vector.extract_strided_slice %1 {offsets = [0, 3], sizes = [8, 1], strides = [1, 1]} : vector<8x8xi32> to vector<8x1xi32>
    %15 = vector.broadcast %14 : vector<8x1xi32> to vector<8x128xi32>
    %16 = arith.cmpi eq, %2, %15 : vector<8x128xi32>
    %17 = arith.ori %13, %16 : vector<8x128xi1>
    %18 = vector.extract_strided_slice %1 {offsets = [0, 4], sizes = [8, 1], strides = [1, 1]} : vector<8x8xi32> to vector<8x1xi32>
    %19 = vector.broadcast %18 : vector<8x1xi32> to vector<8x128xi32>
    %20 = arith.cmpi eq, %2, %19 : vector<8x128xi32>
    %21 = arith.ori %17, %20 : vector<8x128xi1>
    %22 = vector.extract_strided_slice %1 {offsets = [0, 5], sizes = [8, 1], strides = [1, 1]} : vector<8x8xi32> to vector<8x1xi32>
    %23 = vector.broadcast %22 : vector<8x1xi32> to vector<8x128xi32>
    %24 = arith.cmpi eq, %2, %23 : vector<8x128xi32>
    %25 = arith.ori %21, %24 : vector<8x128xi1>
    %26 = vector.extract_strided_slice %1 {offsets = [0, 6], sizes = [8, 1], strides = [1, 1]} : vector<8x8xi32> to vector<8x1xi32>
    %27 = vector.broadcast %26 : vector<8x1xi32> to vector<8x128xi32>
    %28 = arith.cmpi eq, %2, %27 : vector<8x128xi32>
    %29 = arith.ori %25, %28 : vector<8x128xi1>
    %30 = vector.extract_strided_slice %1 {offsets = [0, 7], sizes = [8, 1], strides = [1, 1]} : vector<8x8xi32> to vector<8x1xi32>
    %31 = vector.broadcast %30 : vector<8x1xi32> to vector<8x128xi32>
    %32 = arith.cmpi eq, %2, %31 : vector<8x128xi32>
    %33 = arith.ori %29, %32 : vector<8x128xi1>
    %34 = math.absf %0 : vector<8x128xf32>
    %cst = arith.constant 0.000000e+00 : f32
    %35 = vector.broadcast %cst : f32 to vector<8x128xf32>
    %36 = arith.subf %35, %34 : vector<8x128xf32>
    %37 = math.exp %36 : vector<8x128xf32>
    %cst_3 = arith.constant 1.000000e+00 : f32
    %38 = vector.broadcast %cst_3 : f32 to vector<8x128xf32>
    %39 = arith.addf %38, %37 : vector<8x128xf32>
    %40 = math.log %39 : vector<8x128xf32>
    %cst_4 = arith.constant 0.000000e+00 : f32
    %41 = vector.broadcast %cst_4 : f32 to vector<8x128xf32>
    %42 = arith.subf %41, %0 : vector<8x128xf32>
    %cst_5 = arith.constant 0.000000e+00 : f32
    %43 = vector.broadcast %cst_5 : f32 to vector<8x128xf32>
    %44 = arith.maximumf %42, %43 : vector<8x128xf32>
    %45 = arith.addf %44, %40 : vector<8x128xf32>
    %cst_6 = arith.constant 0.000000e+00 : f32
    %46 = vector.broadcast %cst_6 : f32 to vector<8x128xf32>
    %47 = arith.subf %46, %45 : vector<8x128xf32>
    %cst_7 = arith.constant 0.000000e+00 : f32
    %48 = vector.broadcast %cst_7 : f32 to vector<8x128xf32>
    %49 = arith.maximumf %0, %48 : vector<8x128xf32>
    %50 = arith.addf %49, %40 : vector<8x128xf32>
    %cst_8 = arith.constant 0.000000e+00 : f32
    %51 = vector.broadcast %cst_8 : f32 to vector<8x128xf32>
    %52 = arith.subf %51, %50 : vector<8x128xf32>
    %cst_9 = arith.constant 1.000000e+00 : f32
    %53 = vector.broadcast %cst_9 : f32 to vector<8x128xf32>
    %54 = arith.addf %53, %37 : vector<8x128xf32>
    %cst_10 = arith.constant 1.000000e+00 : f32
    %55 = vector.broadcast %cst_10 : f32 to vector<8x128xf32>
    %56 = arith.divf %55, %54 : vector<8x128xf32>
    %cst_11 = arith.constant 0.000000e+00 : f32
    %57 = vector.broadcast %cst_11 : f32 to vector<8x128xf32>
    %58 = arith.cmpf oge, %0, %57 : vector<8x128xf32>
    %59 = arith.mulf %37, %56 : vector<8x128xf32>
    %60 = arith.select %58, %56, %59 : vector<8x128xi1>, vector<8x128xf32>
    %cst_12 = arith.constant 1.000000e+00 : f32
    %61 = vector.broadcast %cst_12 : f32 to vector<8x128xf32>
    %62 = arith.subf %61, %60 : vector<8x128xf32>
    %cst_13 = arith.constant 1.000000e+00 : f32
    %63 = vector.broadcast %cst_13 : f32 to vector<8x128xf32>
    %cst_14 = arith.constant 1.000000e+00 : f32
    %64 = vector.broadcast %cst_14 : f32 to vector<8x128xf32>
    %65 = arith.mulf %63, %62 : vector<8x128xf32>
    %66 = arith.mulf %64, %60 : vector<8x128xf32>
    %67 = arith.mulf %65, %62 : vector<8x128xf32>
    %68 = arith.mulf %66, %60 : vector<8x128xf32>
    %cst_15 = arith.constant -2.500000e-01 : f32
    %69 = vector.broadcast %cst_15 : f32 to vector<8x128xf32>
    %70 = arith.mulf %69, %67 : vector<8x128xf32>
    %71 = arith.mulf %70, %47 : vector<8x128xf32>
    %cst_16 = arith.constant -7.500000e-01 : f32
    %72 = vector.broadcast %cst_16 : f32 to vector<8x128xf32>
    %73 = arith.mulf %72, %68 : vector<8x128xf32>
    %74 = arith.mulf %73, %52 : vector<8x128xf32>
    %75 = arith.select %33, %71, %74 : vector<8x128xi1>, vector<8x128xf32>
    %c8_i32 = arith.constant 8 : i32
    %76 = arith.muli %arg0, %c8_i32 : i32
    %77 = tpu.iota {dimensions = array<i32: 0>} : vector<8x128xi32>
    %78 = vector.broadcast %76 : i32 to vector<8x128xi32>
    %79 = arith.addi %78, %77 : vector<8x128xi32>
    %c0_i32 = arith.constant 0 : i32
    %80 = vector.broadcast %c0_i32 : i32 to vector<8x128xi32>
    %c16_i32 = arith.constant 16 : i32
    %81 = vector.broadcast %c16_i32 : i32 to vector<8x128xi32>
    %82 = arith.cmpi sge, %2, %81 : vector<8x128xi32>
    %83 = arith.extui %82 : vector<8x128xi1> to vector<8x128xi32>
    %84 = arith.addi %80, %83 : vector<8x128xi32>
    %c32_i32 = arith.constant 32 : i32
    %85 = vector.broadcast %c32_i32 : i32 to vector<8x128xi32>
    %86 = arith.cmpi sge, %2, %85 : vector<8x128xi32>
    %87 = arith.extui %86 : vector<8x128xi1> to vector<8x128xi32>
    %88 = arith.addi %84, %87 : vector<8x128xi32>
    %c48_i32 = arith.constant 48 : i32
    %89 = vector.broadcast %c48_i32 : i32 to vector<8x128xi32>
    %90 = arith.cmpi sge, %2, %89 : vector<8x128xi32>
    %91 = arith.extui %90 : vector<8x128xi1> to vector<8x128xi32>
    %92 = arith.addi %88, %91 : vector<8x128xi32>
    %c64_i32 = arith.constant 64 : i32
    %93 = vector.broadcast %c64_i32 : i32 to vector<8x128xi32>
    %94 = arith.cmpi sge, %2, %93 : vector<8x128xi32>
    %95 = arith.extui %94 : vector<8x128xi1> to vector<8x128xi32>
    %96 = arith.addi %92, %95 : vector<8x128xi32>
    %c80_i32 = arith.constant 80 : i32
    %97 = vector.broadcast %c80_i32 : i32 to vector<8x128xi32>
    %98 = arith.cmpi sge, %2, %97 : vector<8x128xi32>
    %99 = arith.extui %98 : vector<8x128xi1> to vector<8x128xi32>
    %100 = arith.addi %96, %99 : vector<8x128xi32>
    %c96_i32 = arith.constant 96 : i32
    %101 = vector.broadcast %c96_i32 : i32 to vector<8x128xi32>
    %102 = arith.cmpi sge, %2, %101 : vector<8x128xi32>
    %103 = arith.extui %102 : vector<8x128xi1> to vector<8x128xi32>
    %104 = arith.addi %100, %103 : vector<8x128xi32>
    %c112_i32 = arith.constant 112 : i32
    %105 = vector.broadcast %c112_i32 : i32 to vector<8x128xi32>
    %106 = arith.cmpi sge, %2, %105 : vector<8x128xi32>
    %107 = arith.extui %106 : vector<8x128xi1> to vector<8x128xi32>
    %108 = arith.addi %104, %107 : vector<8x128xi32>
    %c8_i32_17 = arith.constant 8 : i32
    %109 = vector.broadcast %c8_i32_17 : i32 to vector<8x128xi32>
    %110 = arith.muli %79, %109 : vector<8x128xi32>
    %111 = arith.addi %110, %108 : vector<8x128xi32>
    %c32_i32_18 = arith.constant 32 : i32
    %112 = vector.broadcast %c32_i32_18 : i32 to vector<8x128xi32>
    %113 = arith.cmpi slt, %111, %112 : vector<8x128xi32>
    %cst_19 = arith.constant 0.000000e+00 : f32
    %114 = vector.broadcast %cst_19 : f32 to vector<8x128xf32>
    %115 = arith.select %113, %75, %114 : vector<8x128xi1>, vector<8x128xf32>
    %cst_20 = arith.constant 0.000000e+00 : f32
    %116 = vector.broadcast %cst_20 : f32 to vector<1x1xf32>
    %117 = vector.shape_cast %115 : vector<8x128xf32> to vector<1x8x128xf32>
    %cst_21 = arith.constant dense<0.000000e+00> : vector<1xf32>
    %118 = vector.multi_reduction <add>, %117, %cst_21 [1, 2] : vector<1x8x128xf32> to vector<1xf32>
    %119 = vector.shape_cast %118 : vector<1xf32> to vector<1x1x1xf32>
    %120 = vector.extract %119[0, 0, 0] : f32 from vector<1x1x1xf32>
    %121 = vector.broadcast %120 : f32 to vector<1x1xf32>
    %122 = arith.addf %116, %121 : vector<1x1xf32>
    %c0_22 = arith.constant 0 : index
    %c0_23 = arith.constant 0 : index
    %c0_24 = arith.constant 0 : index
    %123 = vector.load %arg3[%c0_22, %c0_23, %c0_24] : memref<1x1x1xf32, #tpu.memory_space<vmem>>, vector<1x1x1xf32>
    %124 = vector.shape_cast %123 : vector<1x1x1xf32> to vector<1x1xf32>
    %125 = vector.shape_cast %122 : vector<1x1xf32> to vector<1x1x1xf32>
    tpu.vector_store %arg3[%c0_22, %c0_23, %c0_24], %125 {strides = array<i32>} : memref<1x1x1xf32, #tpu.memory_space<vmem>>, vector<1x1x1xf32>,
    return
  }
  func.func @transform_0(%arg0: i32) -> (i32, i32) {
    %c0_i32 = arith.constant 0 : i32
    %c0_i32_0 = arith.constant 0 : i32
    return %arg0, %c0_i32 : i32, i32
  }
  func.func @transform_1(%arg0: i32) -> (i32, i32) {
    %c0_i32 = arith.constant 0 : i32
    %c0_i32_0 = arith.constant 0 : i32
    return %arg0, %c0_i32 : i32, i32
  }
  func.func @transform_2(%arg0: i32) -> (i32, i32, i32) {
    %c0_i32 = arith.constant 0 : i32
    %c0_i32_0 = arith.constant 0 : i32
    %c0_i32_1 = arith.constant 0 : i32
    return %arg0, %c0_i32, %c0_i32_0 : i32, i32, i32
  }
}

</mosaic_0001>

<bundles_post_ra>
// kernel: tpu_custom_call.1
= control target key start
LH: loop header
LB: loop body
LE: loop exit
PB: predicated region body
PF: predicated region fallthrough
CT: control target
= control target key end

     0   :  { %7 = vsyncpa [#allocation3], 0  ;;  %s351_s0 = inlined_call_operand.hbm [shape: f32[8,128], index: 0, kind: input, shape index: {}]   ;;  %s352_s1 = inlined_call_operand.hbm [shape: s32[8,8], index: 1, kind: input, shape index: {}]   ;;  %s353_s2 = inlined_call_operand.hbm [shape: f32[1,1,1], index: 2, kind: output, shape index: {}]  }
   0x1   :  { %8 = vsyncpa [#allocation6], 0 }
   0x2   :  { %9 = vsyncpa [#allocation4], 0  ;;  %s264_s9 = smov [#allocation2]   ;;  %s265_s11 = smov [#allocation5]  }
   0x3   :  { %s16_s10 = sshll.u32 %s264_s9, 4  ;;  %s26_s12 = sshll.u32 %s265_s11, 4  ;;  %s17_s10 = int_to_ptr.vmem [resolvable:$true] %s16_s10  ;;  %s27_s12 = int_to_ptr.vmem [resolvable:$true] %s26_s12 }
   0x4   :  { %s192_s15 = scalar_lea.hbm %s351_s0, 128 }
   0x5   :  { %p193_p0 = scmp.ne.s32.totalorder %s351_s0, %s192_s15  ;;  %p196_p1 = scmp.lt.u32.totalorder %s192_s15, %s351_s0 }
   0x7   :  { %p198_p2 = pnand %p196_p1, %p193_p0 }
   0x9   :  { %201 = shalt.err (!%p198_p2)
}
   0xa   :  { %s202_s20 = scalar_lea.vmem %s17_s10, 128  ;;  %p207_p4 = scmp.lt.s32.totalorder %s17_s10, %s17_s10 }
   0xb   :  { %p203_p3 = scmp.ne.s32.totalorder %s17_s10, %s202_s20  ;;  %p208_p5 = scmp.lt.s32.totalorder %s202_s20, %s202_s20 }
   0xd   :  { %p209_p6 = por %p208_p5, %p207_p4 }
   0xf   :  { %p210_p7 = pnand %p209_p6, %p203_p3 }
  0x11   :  { %213 = shalt.err (!%p210_p7)
}
  0x12   :  { %19 = dma.hbm_to_vmem [thread:$0]  %s351_s0, 128, %s17_s10, [#allocation3]  }
  0x13   :  { %s214_s25 = scalar_lea.hbm %s352_s1, 128 }
  0x14   :  { %p215_p8 = scmp.ne.s32.totalorder %s352_s1, %s214_s25  ;;  %p218_p9 = scmp.lt.u32.totalorder %s214_s25, %s352_s1 }
  0x16   :  { %p220_p10 = pnand %p218_p9, %p215_p8 }
  0x18   :  { %223 = shalt.err (!%p220_p10)
}
  0x19   :  { %s224_s30 = scalar_lea.vmem %s27_s12, 128  ;;  %p229_p12 = scmp.lt.s32.totalorder %s27_s12, %s27_s12 }
  0x1a   :  { %p225_p11 = scmp.ne.s32.totalorder %s27_s12, %s224_s30  ;;  %p230_p13 = scmp.lt.s32.totalorder %s224_s30, %s224_s30 }
  0x1c   :  { %p231_p0 = por %p230_p13, %p229_p12 }
  0x1e   :  { %p232_p1 = pnand %p231_p0, %p225_p11 }
  0x20   :  { %235 = shalt.err (!%p232_p1)
}
  0x21   :  { %29 = dma.hbm_to_vmem [thread:$0]  %s352_s1, 128, %s27_s12, [#allocation6]  }
  0x22   :  { %258 = dma.done.wait [#allocation3], 128  }
  0x23   :  { %259 = vsyncadd [#allocation3], 4294967168 }
  0x24   :  { %260 = dma.done.wait [#allocation6], 128  }
  0x25   :  { %261 = vsyncadd [#allocation6], 4294967168  ;;  %v266_v0 = vmov 2   ;;  %v267_v1 = vmov 0   ;;  %v37_v2 = vld [vmem:[#allocation5] sm:$0xff]  ;;  %v268_v3 = vmov 3   ;;  %v38_v14 = vlaneseq }
  0x26   :  { %179 = vset.pattern.permute.xlu1 %v266_v0  ;;  %177 = vset.pattern.permute.xlu0 %v267_v1  ;;  %v269_v4 = vmov 1   ;;  %v270_v5 = vmov 4   ;;  %v271_v6 = vmov 5   ;;  %v272_v7 = vmov 6   ;;  %v36_v9 = vld [vmem:[#allocation2] sm:$0xff]  ;;  %s274_s1 = smov [#allocation7]  }
  0x27   :  { %50 = vperm.xlu1 %179, %v37_v2   ;;  %41 = vperm.xlu0 %177, %v37_v2   ;;  %v273_v8 = vmov 7   ;;  %v79_v10 = vand.u32 2147483647, %v36_v9  ;;  %v315_v16 = vand.u32 127, %v38_v14  ;;  %vm95_vm5 = vcmp.ge.f32.partialorder %v36_v9, 0.0  ;;  %s154_s4 = sshll.u32 %s274_s1, 4  ;;  %s155_s4 = int_to_ptr.vmem [resolvable:$true] %s154_s4 }
  0x28   :  { %v86_v28 = vsub.f32 0.0, %v36_v9  ;;  %v90_v37 = vmax.f32 %v36_v9, 0.0  ;;  %v108_v40 = vshrl.u32 %v38_v14, 7  ;;  %s236_s6 = scalar_lea.vmem %s155_s4, 16  ;;  %s240_s7 = scalar_lea.vmem %s155_s4, 32 }
  0x29   :  { %v80_v11 = vsub.f32 0.0, %v79_v10  ;;  %vm111_vm0 = vcmp.ge.s32.totalorder %v315_v16, 16  ;;  %vm113_vm1 = vcmp.ge.s32.totalorder %v315_v16, 32  ;;  %vm116_vm2 = vcmp.ge.s32.totalorder %v315_v16, 48  ;;  %p237_p2 = scmp.ne.s32.totalorder %s155_s4, %s236_s6  ;;  %p241_p3 = scmp.lt.s32.totalorder %s155_s4, %s155_s4 }
  0x2a   :  { %v112_v17 = vsel %vm111_vm0, 1, %v267_v1  ;;  %v114_v18 = vsel %vm113_vm1, 1, %v267_v1  ;;  %v117_v20 = vsel %vm116_vm2, 1, %v267_v1  ;;  %vm119_vm3 = vcmp.ge.s32.totalorder %v315_v16, 64  ;;  %p242_p4 = scmp.lt.s32.totalorder %s240_s7, %s236_s6 }
  0x2b   :  { %180 = vset.pattern.permute.xlu1 %v268_v3  ;;  %178 = vset.pattern.permute.xlu0 %v269_v4  ;;  %v81_v12 = vmul.f32 1.442695, %v80_v11  ;;  %v115_v19 = vadd.s32 %v114_v18, %v112_v17  ;;  %v120_v23 = vsel %vm119_vm3, 1, %v267_v1  ;;  %vm122_vm4 = vcmp.ge.s32.totalorder %v315_v16, 80 }
  0x2c   :  { %55 = vperm.xlu1 %180, %v37_v2   ;;  %45 = vperm.xlu0 %178, %v37_v2   ;;  %v123_v29 = vsel %vm122_vm4, 1, %v267_v1  ;;  %vm125_vm6 = vcmp.ge.s32.totalorder %v315_v16, 96  ;;  %v87_v36 = vmax.f32 %v86_v28, 0.0  ;;  %vm128_vm9 = vcmp.ge.s32.totalorder %v315_v16, 112  ;;  %p243_p5 = por %p242_p4, %p241_p3 }
  0x2d   :  { %186 = vpow2.f32 %v81_v12  ;;  %v118_v22 = vadd.s32 %v117_v20, %v115_v19  ;;  %v126_v38 = vsel %vm125_vm6, 1, %v267_v1  ;;  %v129_v44 = vsel %vm128_vm9, 1, %v267_v1 }
  0x2e   :  { %v131_v49 = vmul.u32 8, %v108_v40  ;;  %p244_p6 = pnand %p243_p5, %p237_p2 }
  0x2f   :  { %v121_v27 = vadd.s32 %v120_v23, %v118_v22 }
  0x30   :  { %181 = vset.pattern.permute.xlu1 %v270_v5  ;;  %182 = vset.pattern.permute.xlu0 %v271_v6 }
  0x31   :  { %60 = vperm.xlu1 %181, %v37_v2   ;;  %65 = vperm.xlu0 %182, %v37_v2   ;;  %v124_v34 = vadd.s32 %v123_v29, %v121_v27 }
  0x33   :  { %v127_v41 = vadd.s32 %v126_v38, %v124_v34 }
  0x35   :  { %183 = vset.pattern.permute.xlu1 %v272_v7  ;;  %185 = vset.pattern.permute.xlu0 %v273_v8  ;;  %v130_v48 = vadd.s32 %v129_v44, %v127_v41 }
  0x36   :  { %70 = vperm.xlu1 %183, %v37_v2  }
  0x37   :  { %v187_v13 = vpop.eup %186  ;;  %v132_v56 = vadd.s32 %v131_v49, %v130_v48 }
  0x38   :  { %v83_v15 = vadd.f32 1.0, %v187_v13 }
  0x39   :  { %vm133_vm6 = vcmp.lt.s32.totalorder %v132_v56, 32 }
  0x3a   :  { %184 = vset.pattern.permute.xlu1 %v273_v8  ;;  %188 = vrcp.f32 %v83_v15 }
  0x3b   :  { %75 = vperm.xlu1 %184, %v37_v2   ;;  %190 = vlog2.f32 %v83_v15 }
  0x44   :  { %v189_v21 = vpop.eup %188 }
  0x45   :  { %v96_v26 = vmul.f32 %v189_v21, %v187_v13  ;;  %v191_v30 = vpop.eup %190 }
  0x46   :  { %v85_v35 = vmul.f32 0.6931472, %v191_v30 }
  0x47   :  { %v97_v31 = vsel %vm95_vm5, %v189_v21, %v96_v26 }
  0x48   :  { %v98_v39 = vsub.f32 1.0, %v97_v31  ;;  %v88_v43 = vadd.f32 %v87_v36, %v85_v35  ;;  %v91_v45 = vadd.f32 %v90_v37, %v85_v35  ;;  %v100_v47 = vmul.f32 %v97_v31, %v97_v31 }
  0x4a   :  { %v99_v46 = vmul.f32 %v98_v39, %v98_v39  ;;  %v89_v51 = vsub.f32 0.0, %v88_v43  ;;  %v92_v53 = vsub.f32 0.0, %v91_v45  ;;  %v103_v55 = vmul.f32 -0.75, %v100_v47 }
  0x4c   :  { %v101_v54 = vmul.f32 -0.25, %v99_v46  ;;  %v104_v58 = vmul.f32 %v103_v55, %v92_v53 }
  0x4e   :  { %v102_v57 = vmul.f32 %v101_v54, %v89_v51 }
  0xa6   :  { %v51_v24 = vpop.permute.xlu1 %50  ;;  %v42_v25 = vpop.permute.xlu0 %41 }
  0xa7   :  { %vm43_vm7 = vcmp.eq.s32.totalorder %v315_v16, %v42_v25  ;;  %vm52_vm11 = vcmp.eq.s32.totalorder %v315_v16, %v51_v24 }
  0xab   :  { %v56_v32 = vpop.permute.xlu1 %55  ;;  %v46_v33 = vpop.permute.xlu0 %45 }
  0xac   :  { %vm47_vm8 = vcmp.eq.s32.totalorder %v315_v16, %v46_v33  ;;  %vm57_vm14 = vcmp.eq.s32.totalorder %v315_v16, %v56_v32 }
  0xad   :  { %vm48_vm10 = vmor %vm43_vm7, %vm47_vm8  ;;  %vm146_vm8 = vcmask 0  }
  0xae   :  { %vm53_vm12 = vmor %vm48_vm10, %vm52_vm11 }
  0xaf   :  { %vm58_vm15 = vmor %vm53_vm12, %vm57_vm14 }
  0xb0   :  { %v61_v42 = vpop.permute.xlu1 %60  ;;  %v66_v50 = vpop.permute.xlu0 %65 }
  0xb1   :  { %vm62_vm13 = vcmp.eq.s32.totalorder %v315_v16, %v61_v42  ;;  %vm67_vm1 = vcmp.eq.s32.totalorder %v315_v16, %v66_v50 }
  0xb2   :  { %vm63_vm0 = vmor %vm58_vm15, %vm62_vm13 }
  0xb3   :  { %vm68_vm3 = vmor %vm63_vm0, %vm67_vm1 }
  0xb5   :  { %v71_v52 = vpop.permute.xlu1 %70 }
  0xb6   :  { %vm72_vm2 = vcmp.eq.s32.totalorder %v315_v16, %v71_v52 }
  0xb7   :  { %vm73_vm4 = vmor %vm68_vm3, %vm72_vm2 }
  0xba   :  { %v76_v59 = vpop.permute.xlu1 %75 }
  0xbb   :  { %vm77_vm5 = vcmp.eq.s32.totalorder %v315_v16, %v76_v59 }
  0xbc   :  { %vm78_vm7 = vmor %vm73_vm4, %vm77_vm5 }
  0xbd   :  { %v105_v60 = vsel %vm78_vm7, %v102_v57, %v104_v58 }
  0xbe   :  { %v134_v61 = vsel %vm133_vm6, %v105_v60, 0.0 }
  0xbf   :  { %135 = vadd.xlane.f32.xlu0 %v134_v61 }
 0x14c   :  { %v136_v62 = vpop.xlane.xlu0 %135 }
 0x14d   :  { %v137_v63 = vrot.slane %v136_v62, 4 }
 0x14f   :  { %v138_v0 = vadd.f32 %v137_v63, %v136_v62 }
 0x151   :  { %v139_v1 = vrot.slane %v138_v0, 2 }
 0x153   :  { %v140_v2 = vadd.f32 %v139_v1, %v138_v0 }
 0x155   :  { %v141_v3 = vrot.slane %v140_v2, 1 }
 0x157   :  { %v142_v4 = vadd.f32 %v141_v3, %v140_v2 }
 0x159   :  { %164 = vpush %v142_v4 }
 0x18a   :  { %s165_s5 = spop %164 }
 0x18b   :  { %v144_v5 = vstv %s165_s5 }
 0x18c   :  { %147 = vst.msk [vmem:[#allocation7] sm:$0x1] %vm146_vm8, %v144_v5 }
 0x18d   :  { %247 = shalt.err (!%p244_p6)
}
 0x18e   :  { %s248_s10 = scalar_lea.hbm %s353_s2, 16 }
 0x18f   :  { %p249_p7 = scmp.ne.s32.totalorder %s353_s2, %s248_s10  ;;  %p252_p8 = scmp.lt.u32.totalorder %s248_s10, %s353_s2 }
 0x191   :  { %p254_p9 = pnand %p252_p8, %p249_p7 }
 0x193   :  { %257 = shalt.err (!%p254_p9)
}
 0x194   :  { %157 = dma.vmem_to_hbm [thread:$0]  %s155_s4, 16, %s353_s2, [#allocation4]  }
 0x195   :  { %262 = dma.done.wait [#allocation4], 16  }
 0x196   :  { %263 = vsyncadd [#allocation4], 4294967280 }
 0x197   :  { %161 = vsyncpa [#allocation3], 1 }
 0x198   :  { %162 = vsyncpa [#allocation6], 1 }
 0x199   :  { %163 = vsyncpa [#allocation4], 1 }

</bundles_post_ra>
